<compile_context>
chip_gen: v7x
topology: tpu7x:2x2x1
jax: 0.10.0
libtpu: 0.0.40
codegen_flags: <defaults>
</compile_context>

<pallas_src>
import math

import jax
import jax.numpy as jnp
from jax.experimental import pallas as pl
from jax.experimental.pallas import tpu as pltpu

# Module constants (from the PyTorch source)
d_k = d_v = 64
n_heads = 12  # demo head count (the module itself only fixes d_k = d_v = 64)


# ---------------------------------------------------------------------------
# Kernel: scaled dot-product attention, all heads of one batch per grid step
# ---------------------------------------------------------------------------
def _sdpa_kernel(q_ref, k_ref, v_ref, m_ref, o_ref):
    q = q_ref[0]            # [H, S, d_k] f32
    k = k_ref[0]            # [H, S, d_k] f32
    v = v_ref[0]            # [H, S, d_v] f32
    m = m_ref[...]          # [1, S, S]   int32 (1 = masked); broadcasts over heads

    # Fold the 1/sqrt(d_k) scale into Q, then feed the MXU bf16 operands.
    scale = jnp.float32(1.0 / math.sqrt(d_k))
    qh = (q * scale).astype(jnp.bfloat16)
    kh = k.astype(jnp.bfloat16)

    # scores[h, i, j] = sum_d q[h, i, d] * k[h, j, d]   (no explicit K^T relayout)
    scores = jnp.einsum(
        "hqd,hkd->hqk", qh, kh, preferred_element_type=jnp.float32
    )  # [H, S, S] f32

    # masked_fill(attn_mask, -1e9): mask shared across heads.
    scores = jnp.where(m > 0, jnp.float32(-1e9), scores)

    # Numerically stable softmax along the key axis (f32 throughout).
    scores = scores - jnp.max(scores, axis=-1, keepdims=True)
    p = jnp.exp(scores)
    denom = jnp.sum(p, axis=-1, keepdims=True)
    attn = p * pl.reciprocal(denom, approx=True)

    ctx = jnp.einsum(
        "hqk,hkd->hqd",
        attn.astype(jnp.bfloat16),
        v.astype(jnp.bfloat16),
        preferred_element_type=jnp.float32,
    )  # [H, S, d_v] f32
    o_ref[0] = ctx.astype(o_ref.dtype)


def scaled_dot_product_attention(Q, K, V, attn_mask):
    """Q, K: [B, H, S, d_k]; V: [B, H, S, d_v]; attn_mask: [B, S, S] (True/1 = masked)."""
    B, H, S, Dk = Q.shape
    Dv = V.shape[-1]
    assert K.shape == (B, H, S, Dk)
    assert V.shape[:3] == (B, H, S)
    assert attn_mask.shape == (B, S, S)

    mask_i32 = attn_mask.astype(jnp.int32)

    return pl.pallas_call(
        _sdpa_kernel,
        out_shape=jax.ShapeDtypeStruct((B, H, S, Dv), jnp.float32),
        grid=(B,),
        in_specs=[
            pl.BlockSpec((1, H, S, Dk), lambda b: (b, 0, 0, 0)),
            pl.BlockSpec((1, H, S, Dk), lambda b: (b, 0, 0, 0)),
            pl.BlockSpec((1, H, S, Dv), lambda b: (b, 0, 0, 0)),
            pl.BlockSpec((1, S, S), lambda b: (b, 0, 0)),
        ],
        out_specs=pl.BlockSpec((1, H, S, Dv), lambda b: (b, 0, 0, 0)),
        compiler_params=pltpu.CompilerParams(
            dimension_semantics=("parallel",)
        ),
    )(Q, K, V, mask_i32)


if __name__ == "__main__":
    key = jax.random.PRNGKey(0)
    kq, kk, kv = jax.random.split(key, 3)

    B, H, S = 2, n_heads, 8  # small batch / sequence; d_k = d_v = 64 fixed by module

    Q = jax.random.normal(kq, (B, H, S, d_k), jnp.float32)
    K = jax.random.normal(kk, (B, H, S, d_k), jnp.float32)
    V = jax.random.normal(kv, (B, H, S, d_v), jnp.float32)

    # padding-style attention mask: mask the last 2 key positions (True = masked)
    pad = jnp.zeros((B, S), dtype=bool).at[:, -2:].set(True)
    attn_mask = jnp.broadcast_to(pad[:, None, :], (B, S, S))

    out = scaled_dot_product_attention(Q, K, V, attn_mask)
    jax.block_until_ready(out)

    # Pure-JAX f32 reference (exactly the PyTorch math); loose tolerance since
    # the kernel's matmul operands are bf16 (f32 accumulation).
    scores = jnp.einsum("bhqd,bhkd->bhqk", Q, K) / math.sqrt(d_k)
    scores = jnp.where(attn_mask[:, None, :, :], -1e9, scores)
    ref = jnp.einsum("bhqk,bhkd->bhqd", jax.nn.softmax(scores, axis=-1), V)

    assert out.shape == (B, H, S, d_v)
    assert jnp.all(jnp.isfinite(out))
    max_err = float(jnp.max(jnp.abs(out - ref)))
    assert max_err < 1e-1, f"max abs error vs f32 reference: {max_err}"
    print("KERNEL_OK")
</pallas_src>

<mosaic_0001>
module attributes {stable_mosaic.version = 11 : i64} {
  func.func @_sdpa_kernel(%arg0: i32, %arg1: memref<1x12x8x64xf32, #tpu.memory_space<vmem>>, %arg2: memref<1x12x8x64xf32, #tpu.memory_space<vmem>>, %arg3: memref<1x12x8x64xf32, #tpu.memory_space<vmem>>, %arg4: memref<1x8x8xi32, #tpu.memory_space<vmem>>, %arg5: memref<1x12x8x64xf32, #tpu.memory_space<vmem>>) attributes {dimension_semantics = [#tpu.dimension_semantics<parallel>], iteration_bounds = array<i64: 2>, scalar_prefetch = 0 : i64, scratch_operands = 0 : i64, tpu.core_type = #tpu.core_type<tc>, window_params = [{transform_indices = @transform_0, window_bounds = array<i64: 1, 12, 8, 64>}, {transform_indices = @transform_1, window_bounds = array<i64: 1, 12, 8, 64>}, {transform_indices = @transform_2, window_bounds = array<i64: 1, 12, 8, 64>}, {transform_indices = @transform_3, window_bounds = array<i64: 1, 8, 8>}, {transform_indices = @transform_4, window_bounds = array<i64: 1, 12, 8, 64>}]} {
    %c0 = arith.constant 0 : index
    %c0_0 = arith.constant 0 : index
    %c0_1 = arith.constant 0 : index
    %c0_2 = arith.constant 0 : index
    %0 = vector.load %arg1[%c0, %c0_0, %c0_1, %c0_2] : memref<1x12x8x64xf32, #tpu.memory_space<vmem>>, vector<1x12x8x64xf32>
    %1 = vector.shape_cast %0 : vector<1x12x8x64xf32> to vector<12x8x64xf32>
    %c0_3 = arith.constant 0 : index
    %c0_4 = arith.constant 0 : index
    %c0_5 = arith.constant 0 : index
    %c0_6 = arith.constant 0 : index
    %2 = vector.load %arg2[%c0_3, %c0_4, %c0_5, %c0_6] : memref<1x12x8x64xf32, #tpu.memory_space<vmem>>, vector<1x12x8x64xf32>
    %3 = vector.shape_cast %2 : vector<1x12x8x64xf32> to vector<12x8x64xf32>
    %c0_7 = arith.constant 0 : index
    %c0_8 = arith.constant 0 : index
    %c0_9 = arith.constant 0 : index
    %c0_10 = arith.constant 0 : index
    %4 = vector.load %arg3[%c0_7, %c0_8, %c0_9, %c0_10] : memref<1x12x8x64xf32, #tpu.memory_space<vmem>>, vector<1x12x8x64xf32>
    %5 = vector.shape_cast %4 : vector<1x12x8x64xf32> to vector<12x8x64xf32>
    %c0_11 = arith.constant 0 : index
    %c0_12 = arith.constant 0 : index
    %c0_13 = arith.constant 0 : index
    %6 = vector.load %arg4[%c0_11, %c0_12, %c0_13] : memref<1x8x8xi32, #tpu.memory_space<vmem>>, vector<1x8x8xi32>
    %cst = arith.constant 1.250000e-01 : f32
    %7 = vector.broadcast %cst : f32 to vector<12x8x64xf32>
    %8 = arith.mulf %1, %7 : vector<12x8x64xf32>
    %9 = arith.truncf %8 : vector<12x8x64xf32> to vector<12x8x64xbf16>
    %10 = arith.truncf %3 : vector<12x8x64xf32> to vector<12x8x64xbf16>
    "tpu.trace_start"() <{level = 10 : i32, message = "hqd,hkd->hqk"}> : () -> ()
    %cst_14 = arith.constant dense<0.000000e+00> : vector<12x8x8xf32>
    %11 = tpu.matmul %9, %10, %cst_14 {dimension_numbers = #tpu.dot_dimension_numbers<[2], [2], [1], [1], [0, 0, 0, 1, 1, 1], [0], [0]>} : vector<12x8x64xbf16>, vector<12x8x64xbf16>, vector<12x8x8xf32> -> vector<12x8x8xf32>
    %c0_i32 = arith.constant 0 : i32
    "tpu.trace_stop"() : () -> ()
    %12 = vector.broadcast %c0_i32 : i32 to vector<1x8x8xi32>
    %13 = arith.cmpi sgt, %6, %12 : vector<1x8x8xi32>
    %cst_15 = arith.constant -1.000000e+09 : f32
    %14 = vector.shape_cast %13 : vector<1x8x8xi1> to vector<1x8x8xi1>
    %15 = vector.broadcast %14 : vector<1x8x8xi1> to vector<12x8x8xi1>
    %16 = vector.broadcast %cst_15 : f32 to vector<12x8x8xf32>
    %17 = arith.select %15, %16, %11 : vector<12x8x8xi1>, vector<12x8x8xf32>
    %cst_16 = arith.constant dense<0xFF800000> : vector<12x8xf32>
    %18 = vector.multi_reduction <maximumf>, %17, %cst_16 [2] : vector<12x8x8xf32> to vector<12x8xf32>
    %19 = vector.shape_cast %18 : vector<12x8xf32> to vector<12x8x1xf32>
    %20 = vector.broadcast %19 : vector<12x8x1xf32> to vector<12x8x8xf32>
    %21 = arith.subf %17, %20 : vector<12x8x8xf32>
    %22 = math.exp %21 : vector<12x8x8xf32>
    %cst_17 = arith.constant dense<0.000000e+00> : vector<12x8xf32>
    %23 = vector.multi_reduction <add>, %22, %cst_17 [2] : vector<12x8x8xf32> to vector<12x8xf32>
    %24 = vector.shape_cast %23 : vector<12x8xf32> to vector<12x8x1xf32>
    %25 = tpu.reciprocal %24 {approx = true} : vector<12x8x1xf32> -> vector<12x8x1xf32>
    %26 = vector.broadcast %25 : vector<12x8x1xf32> to vector<12x8x8xf32>
    %27 = arith.mulf %22, %26 : vector<12x8x8xf32>
    %28 = arith.truncf %27 : vector<12x8x8xf32> to vector<12x8x8xbf16>
    %29 = arith.truncf %5 : vector<12x8x64xf32> to vector<12x8x64xbf16>
    "tpu.trace_start"() <{level = 10 : i32, message = "hqk,hkd->hqd"}> : () -> ()
    %cst_18 = arith.constant dense<0.000000e+00> : vector<12x8x64xf32>
    %30 = tpu.matmul %28, %29, %cst_18 {dimension_numbers = #tpu.dot_dimension_numbers<[2], [1], [1], [2], [0, 0, 0, 1, 1, 2], [0], [0]>} : vector<12x8x8xbf16>, vector<12x8x64xbf16>, vector<12x8x64xf32> -> vector<12x8x64xf32>
    "tpu.trace_stop"() : () -> ()
    %c0_19 = arith.constant 0 : index
    %c0_20 = arith.constant 0 : index
    %c0_21 = arith.constant 0 : index
    %c0_22 = arith.constant 0 : index
    %31 = vector.load %arg5[%c0_19, %c0_20, %c0_21, %c0_22] : memref<1x12x8x64xf32, #tpu.memory_space<vmem>>, vector<1x12x8x64xf32>
    %32 = vector.shape_cast %31 : vector<1x12x8x64xf32> to vector<12x8x64xf32>
    %33 = vector.shape_cast %30 : vector<12x8x64xf32> to vector<1x12x8x64xf32>
    tpu.vector_store %arg5[%c0_19, %c0_20, %c0_21, %c0_22], %33 {strides = array<i32>} : memref<1x12x8x64xf32, #tpu.memory_space<vmem>>, vector<1x12x8x64xf32>,
    return
  }
  func.func @transform_0(%arg0: i32) -> (i32, i32, i32, i32) {
    %c0_i32 = arith.constant 0 : i32
    %c0_i32_0 = arith.constant 0 : i32
    %c0_i32_1 = arith.constant 0 : i32
    %c0_i32_2 = arith.constant 0 : i32
    return %arg0, %c0_i32, %c0_i32_0, %c0_i32_1 : i32, i32, i32, i32
  }
  func.func @transform_1(%arg0: i32) -> (i32, i32, i32, i32) {
    %c0_i32 = arith.constant 0 : i32
    %c0_i32_0 = arith.constant 0 : i32
    %c0_i32_1 = arith.constant 0 : i32
    %c0_i32_2 = arith.constant 0 : i32
    return %arg0, %c0_i32, %c0_i32_0, %c0_i32_1 : i32, i32, i32, i32
  }
  func.func @transform_2(%arg0: i32) -> (i32, i32, i32, i32) {
    %c0_i32 = arith.constant 0 : i32
    %c0_i32_0 = arith.constant 0 : i32
    %c0_i32_1 = arith.constant 0 : i32
    %c0_i32_2 = arith.constant 0 : i32
    return %arg0, %c0_i32, %c0_i32_0, %c0_i32_1 : i32, i32, i32, i32
  }
  func.func @transform_3(%arg0: i32) -> (i32, i32, i32) {
    %c0_i32 = arith.constant 0 : i32
    %c0_i32_0 = arith.constant 0 : i32
    %c0_i32_1 = arith.constant 0 : i32
    return %arg0, %c0_i32, %c0_i32_0 : i32, i32, i32
  }
  func.func @transform_4(%arg0: i32) -> (i32, i32, i32, i32) {
    %c0_i32 = arith.constant 0 : i32
    %c0_i32_0 = arith.constant 0 : i32
    %c0_i32_1 = arith.constant 0 : i32
    %c0_i32_2 = arith.constant 0 : i32
    return %arg0, %c0_i32, %c0_i32_0, %c0_i32_1 : i32, i32, i32, i32
  }
}

</mosaic_0001>

<bundles_post_ra>
// kernel: tpu_custom_call.1
= control target key start
LH: loop header
LB: loop body
LE: loop exit
PB: predicated region body
PF: predicated region fallthrough
CT: control target
= control target key end

     0   :  { %s3061_s0 = inlined_call_operand.hbm [shape: f32[2,12,8,64], index: 0, kind: input, shape index: {}]   ;;  %s3062_s1 = inlined_call_operand.hbm [shape: f32[2,12,8,64], index: 1, kind: input, shape index: {}]   ;;  %s3063_s2 = inlined_call_operand.hbm [shape: f32[2,12,8,64], index: 2, kind: input, shape index: {}]   ;;  %s3064_s3 = inlined_call_operand.hbm [shape: s32[2,8,8], index: 3, kind: input, shape index: {}]   ;;  %s3065_s4 = inlined_call_operand.hbm [shape: f32[2,12,8,64], index: 4, kind: output, shape index: {}]  }
   0x1   :  { %3073 = sst [smem:[#allocation16_spill]] %s3061_s0 }
   0x2   :  { %3074 = sst [smem:[#allocation17_spill]] %s3062_s1 }
   0x3   :  { %9 = vsyncpa [#allocation3], 0 }
   0x4   :  { %11 = vsyncpa [#allocation3 + $0x1], 0 }
   0x5   :  { %12 = vsyncpa [#allocation6], 0 }
   0x6   :  { %14 = vsyncpa [#allocation6 + $0x1], 0 }
   0x7   :  { %15 = vsyncpa [#allocation9], 0 }
   0x8   :  { %17 = vsyncpa [#allocation9 + $0x1], 0 }
   0x9   :  { %18 = vsyncpa [#allocation4], 0 }
   0xa   :  { %20 = vsyncpa [#allocation4 + $0x1], 0  ;;  %s2431_s15 = smov 0   ;;  %s2433_s16 = smov 0  }
   0xb   :  { %s2435_s17 = smov 0   ;;  %s2437_s18 = smov 0  }
   0xc LB: > { %s2452_s19 = sadd.s32 4294967295, %s2393_s18   ;;  %s1847_s20 = sadd.s32 4294967294, %s2393_s18   ;;  %s2393_s18 = sphi %s2437_s18, %s3097_s18   ;;  %s2389_s17 = sphi %s2435_s17, %s3096_s17   ;;  %s2385_s16 = sphi %s2433_s16, %s3095_s16   ;;  %s2381_s15 = sphi %s2431_s15, %s3094_s15  }
   0xd   : > { %s2456_s21 = sadd.s32 1, %s2393_s18   ;;  %s33_s22 = sadd.s32 1, %s2389_s17 }
   0xe   : > { %s30_s23 = ssub.s32 %s2393_s18, %s2456_s21  ;;  %p40_p0 = scmp.ne.s32.totalorder %s2389_s17, %s2385_s16 }
   0xf   : > { %p31_p1 = scmp.eq.s32.totalorder %s30_s23, 0  ;;  %p41_p2 = scmp.eq.s32.totalorder %s2393_s18, 0 }
  0x10   : > { %p46_p3 = scmp.ne.s32.totalorder %s2385_s16, %s2381_s15  ;;  %p47_p4 = scmp.eq.s32.totalorder %s2452_s19, 0 }
  0x11   : > { %s2468_s24 = scalar_select %p31_p1, %s2389_s17, %s33_s22  }
  0x12   : > { %p42_p5 = por %p41_p2, %p40_p0  ;;  %p2470_p6 = por %p47_p4, %p46_p3 }
  0x13   : > { %3075 = sst [smem:[#allocation15_spill]] %s2468_s24  ;;  %p148_p7 = scmp.eq.s32.totalorder %s2452_s19, 1 }
  0x14   : > { %s3076_s25 = scalar_select %p2470_p6, 1, 0 }
  0x15   : > { %p154_p8 = scmp.eq.s32.totalorder %s1847_s20, 1  ;;  %p2111_p10 = scmp.lt.s32.totalorder %s2393_s18, 2 }
  0x16   : > { %p2477_p11 = por %p148_p7, %p40_p0  ;;  %s2486_s28 = sand.u32 1, %s2389_s17  }
  0x17   : > { %p2481_p12 = por %p154_p8, %p46_p3  ;;  %s2489_s29 = smul.u32 1536, %s2393_s18 }
  0x18   : > { %s3077_s26 = scalar_select %p2477_p11, 1, 0 }
  0x19   : > { %s3078_s27 = scalar_select %p2481_p12, 1, 0 }
  0x1a   : > { %s2492_s30 = smul.u32 96, %s2486_s28  ;;  %p2494_p13 = pnand %p2111_p10, %p42_p5 }
  0x1b   : > { %s195_s6 = sand.u32 1, %s2393_s18   ;;  %s3080_s1 = sld [smem:[#allocation17_spill]] }
  0x1c   : > { %s3079_s5 = scalar_select %p2494_p13, 1, 0 }
  0x1d   : > { %s199_s10 = scalar_lea.vmem [#allocation5], %s2492_s30  ;;  %s2509_s12 = scalar_lea.sflag [#allocation6], %s195_s6 }
  0x1e   : > { %s206_s11 = sshll.u32 %s199_s10, 4  ;;  %p2515_p2 = pneg %p2494_p13  ;;  %s2506_s11 = int_to_ptr.vmem [resolvable:$true] %s206_s11 }
  0x21   : > { %s2503_s9 = scalar_lea.hbm %s3080_s1, %s2489_s29  ;;  %s2204_s23 = scalar_lea.hbm %s3080_s1, 3072 }
  0x22   : > { %s2199_s13 = scalar_lea.hbm %s2503_s9, 1536  ;;  %p2205_p5 = scmp.lt.u32.totalorder %s2503_s9, %s3080_s1 }
  0x23   : > { %p2200_p1 = scmp.ne.s32.totalorder %s2503_s9, %s2199_s13  ;;  %p2206_p7 = scmp.lt.u32.totalorder %s2204_s23, %s2199_s13 }
  0x24   : > { %p2208_p10 = scmp.lt.u32.totalorder %s2199_s13, %s2503_s9 }
  0x25   : > { %p2202_p3 = pnand %p2515_p2, %p2200_p1  ;;  %p2207_p8 = por %p2206_p7, %p2205_p5 }
  0x27   : > { %p2203_p4 = pneg %p2202_p3  ;;  %p2209_p9 = por %p2208_p10, %p2207_p8 }
  0x29   : > { %p2210_p0 = pnand %p2209_p9, %p2203_p4 }
  0x2b   : > { %2213 = shalt.err (!%p2210_p0)
}
  0x2c   : > { %s2214_s6 = scalar_lea.vmem %s2506_s11, 1536  ;;  %s2395_s10 = smov [#allocation5]  }
  0x2d   : > { %p2215_p1 = scmp.ne.s32.totalorder %s2506_s11, %s2214_s6  ;;  %s2219_s20 = sshll.u32 %s2395_s10, 4  ;;  %s2220_s20 = int_to_ptr.vmem [resolvable:$false] %s2219_s20 }
  0x2e   : > { %s2221_s22 = scalar_lea.vmem %s2220_s20, 3072  ;;  %p2222_p11 = scmp.lt.s32.totalorder %s2506_s11, %s2220_s20 }
  0x2f   : > { %p2217_p3 = pnand %p2215_p1, %p2515_p2  ;;  %p2223_p6 = scmp.lt.s32.totalorder %s2221_s22, %s2214_s6 }
  0x31   : > { %p2218_p12 = pneg %p2217_p3  ;;  %p2224_p5 = por %p2223_p6, %p2222_p11 }
  0x33   : > { %p2225_p7 = pnand %p2224_p5, %p2218_p12 }
  0x35   : > { %2228 = shalt.err (!%p2225_p7)
}
  0x36   : > { %s3068_s13 = smov 128   ;;  %s3070_s23 = smov 8  }
  0x37   : > { %2100 = dma.hbm_to_vmem [thread:$0]  (!%p2494_p13), %s2503_s9, 1536, %s2506_s11, %s2509_s12, %s3068_s13, %s3068_s13, %s3070_s23  }
  0x38   : > { %p253_p6 = scmp.lt.s32.totalorder %s2393_s18, 3  ;;  %s3082_s0 = sld [smem:[#allocation16_spill]] }
  0x39   : > { %p3083_p9 = scmp.ge.s32.totalorder %s2393_s18, 1  ;;  %s178_s20 = scalar_lea.vmem [#allocation2], %s2492_s30 }
  0x3a   : > { %s185_s22 = sshll.u32 %s178_s20, 4  ;;  %s175_s9 = scalar_lea.sflag [#allocation3], %s2486_s28  ;;  %s2556_s22 = int_to_ptr.vmem [resolvable:$true] %s185_s22 }
  0x3b   : > { %p2551_p11 = pnand %p3083_p9, %p253_p6 }
  0x3d   : > { %s3084_s10 = scalar_select %p2551_p11, 1, 0 }
  0x3e   : > { %s2547_s6 = scalar_lea.hbm %s3082_s0, %s2489_s29  ;;  %s2234_s13 = scalar_lea.hbm %s3082_s0, 3072 }
  0x3f   : > { %s2229_s11 = scalar_lea.hbm %s2547_s6, 1536  ;;  %p2235_p8 = scmp.lt.u32.totalorder %s2547_s6, %s3082_s0 }
  0x40   : > { %p2230_p12 = scmp.ne.s32.totalorder %s2547_s6, %s2229_s11  ;;  %p2236_p10 = scmp.lt.u32.totalorder %s2234_s13, %s2229_s11 }
  0x41   : > { %p2238_p3 = scmp.lt.u32.totalorder %s2229_s11, %s2547_s6 }
  0x42   : > { %p2232_p0 = pnand %p2230_p12, %p2515_p2  ;;  %p2237_p1 = por %p2236_p10, %p2235_p8 }
  0x44   : > { %p2233_p4 = pneg %p2232_p0  ;;  %p2239_p5 = por %p2238_p3, %p2237_p1 }
  0x46   : > { %p2240_p7 = pnand %p2239_p5, %p2233_p4 }
  0x48   : > { %2243 = shalt.err (!%p2240_p7)
}
  0x49   : > { %s2244_s20 = scalar_lea.vmem %s2556_s22, 1536  ;;  %s2398_s7 = smov [#allocation2]  }
  0x4a   : > { %p2245_p6 = scmp.ne.s32.totalorder %s2556_s22, %s2244_s20  ;;  %s2249_s8 = sshll.u32 %s2398_s7, 4  ;;  %s2250_s8 = int_to_ptr.vmem [resolvable:$false] %s2249_s8 }
  0x4b   : > { %s2251_s1 = scalar_lea.vmem %s2250_s8, 3072  ;;  %p2252_p0 = scmp.lt.s32.totalorder %s2556_s22, %s2250_s8 }
  0x4c   : > { %p2247_p9 = pnand %p2245_p6, %p2515_p2  ;;  %p2253_p11 = scmp.lt.s32.totalorder %s2251_s1, %s2244_s20 }
  0x4e   : > { %p2248_p12 = pneg %p2247_p9  ;;  %p2254_p8 = por %p2253_p11, %p2252_p0 }
  0x50   : > { %p2255_p10 = pnand %p2254_p8, %p2248_p12 }
  0x52   : > { %2258 = shalt.err (!%p2255_p10)
}
  0x53   : > { %s3085_s13 = smov 8   ;;  %s3086_s23 = smov 128  }
  0x54   : > { %2097 = dma.hbm_to_vmem [thread:$0]  (!%p2494_p13), %s2547_s6, 1536, %s2556_s22, %s175_s9, %s3086_s23, %s3086_s23, %s3085_s13  }
  0x55   : > { %s2589_s20 = scalar_lea.hbm %s3063_s2, %s2489_s29  ;;  %s220_s8 = scalar_lea.vmem [#allocation7], %s2492_s30 }
  0x56   : > { %s227_s1 = sshll.u32 %s220_s8, 4  ;;  %s2259_s0 = scalar_lea.hbm %s2589_s20, 1536  ;;  %s2592_s1 = int_to_ptr.vmem [resolvable:$true] %s227_s1 }
  0x57   : > { %p2260_p11 = scmp.ne.s32.totalorder %s2589_s20, %s2259_s0  ;;  %s2264_s22 = scalar_lea.hbm %s3063_s2, 3072 }
  0x58   : > { %p2265_p3 = scmp.lt.u32.totalorder %s2589_s20, %s3063_s2  ;;  %p2266_p5 = scmp.lt.u32.totalorder %s2264_s22, %s2259_s0 }
  0x59   : > { %p2262_p4 = pnand %p2260_p11, %p2515_p2  ;;  %p2268_p6 = scmp.lt.u32.totalorder %s2259_s0, %s2589_s20 }
  0x5a   : > { %p2267_p7 = por %p2266_p5, %p2265_p3 }
  0x5b   : > { %p2263_p1 = pneg %p2262_p4 }
  0x5c   : > { %p2269_p9 = por %p2268_p6, %p2267_p7 }
  0x5e   : > { %p2270_p12 = pnand %p2269_p9, %p2263_p1 }
  0x60   : > { %2273 = shalt.err (!%p2270_p12)
}
  0x61   : > { %s2274_s30 = scalar_lea.vmem %s2592_s1, 1536  ;;  %s2399_s24 = smov [#allocation7]  }
  0x62   : > { %p2275_p0 = scmp.ne.s32.totalorder %s2592_s1, %s2274_s30  ;;  %s2279_s11 = sshll.u32 %s2399_s24, 4  ;;  %s2280_s11 = int_to_ptr.vmem [resolvable:$false] %s2279_s11 }
  0x63   : > { %s2281_s7 = scalar_lea.vmem %s2280_s11, 3072  ;;  %p2282_p11 = scmp.lt.s32.totalorder %s2592_s1, %s2280_s11 }
  0x64   : > { %p2277_p8 = pnand %p2275_p0, %p2515_p2  ;;  %p2283_p4 = scmp.lt.s32.totalorder %s2281_s7, %s2274_s30 }
  0x66   : > { %p2278_p10 = pneg %p2277_p8  ;;  %p2284_p3 = por %p2283_p4, %p2282_p11 }
  0x68   : > { %p2285_p5 = pnand %p2284_p3, %p2278_p10 }
  0x6a   : > { %2288 = shalt.err (!%p2285_p5)
}
  0x6b   : > { %2103 = dma.hbm_to_vmem [thread:$0]  (!%p2494_p13), %s2589_s20, 1536, %s2592_s1, %s2509_s12, %s3086_s23, %s3086_s23, %s3085_s13  }
  0x6c   : > { %s1853_s0 = sshll.u32 %s2486_s28, 3  ;;  %s1854_s8 = sshll.u32 %s2393_s18, 7 }
  0x6d   : > { %s2624_s9 = scalar_lea.hbm %s3064_s3, %s1854_s8  ;;  %s241_s29 = scalar_lea.vmem [#allocation8], %s1853_s0 }
  0x6e   : > { %s248_s30 = sshll.u32 %s241_s29, 4  ;;  %s238_s24 = scalar_lea.sflag [#allocation9], %s2486_s28  ;;  %s249_s30 = int_to_ptr.vmem [resolvable:$true] %s248_s30 }
  0x6f   : > { %s2289_s11 = scalar_lea.hbm %s2624_s9, 128  ;;  %s2294_s23 = scalar_lea.hbm %s3064_s3, 256 }
  0x70   : > { %p2290_p1 = scmp.ne.s32.totalorder %s2624_s9, %s2289_s11  ;;  %p2295_p9 = scmp.lt.u32.totalorder %s2624_s9, %s3064_s3 }
  0x71   : > { %p2296_p12 = scmp.lt.u32.totalorder %s2294_s23, %s2289_s11  ;;  %p2298_p8 = scmp.lt.u32.totalorder %s2289_s11, %s2624_s9 }
  0x72   : > { %p2292_p7 = pnand %p2290_p1, %p2515_p2 }
  0x73   : > { %p2297_p0 = por %p2296_p12, %p2295_p9 }
  0x74   : > { %p2293_p6 = pneg %p2292_p7 }
  0x75   : > { %p2299_p10 = por %p2298_p8, %p2297_p0 }
  0x77   : > { %p2300_p11 = pnand %p2299_p10, %p2293_p6 }
  0x79   : > { %2303 = shalt.err (!%p2300_p11)
}
  0x7a   : > { %s2304_s28 = scalar_lea.vmem %s249_s30, 128  ;;  %s2400_s7 = smov [#allocation8]  }
  0x7b   : > { %p2305_p4 = scmp.ne.s32.totalorder %s249_s30, %s2304_s28  ;;  %s2309_s0 = sshll.u32 %s2400_s7, 4  ;;  %s2310_s0 = int_to_ptr.vmem [resolvable:$false] %s2309_s0 }
  0x7c   : > { %s2311_s8 = scalar_lea.vmem %s2310_s0, 256  ;;  %p2312_p1 = scmp.lt.s32.totalorder %s249_s30, %s2310_s0 }
  0x7d   : > { %p2307_p3 = pnand %p2305_p4, %p2515_p2  ;;  %p2313_p7 = scmp.lt.s32.totalorder %s2311_s8, %s2304_s28 }
  0x7f   : > { %p2308_p5 = pneg %p2307_p3  ;;  %p2314_p13 = por %p2313_p7, %p2312_p1 }
  0x81   : > { %p2315_p9 = pnand %p2314_p13, %p2308_p5 }
  0x83   : > { %2318 = shalt.err (!%p2315_p9)
}
  0x84   : > { %p3087_p12 = scmp.ne.s32.totalorder %s3079_s5, 0  ;;  %p3088_p6 = scmp.ne.s32.totalorder %s3084_s10, 0 }
  0x85   : > { %s2647_s14 = sand.u32 (!%p3088_p6), 1, %s2385_s16   ;;  %p3089_p13 = scmp.ne.s32.totalorder (!%p3088_p6), %s3076_s25, 0 }
  0x86   : > { %2106 = dma.hbm_to_vmem [thread:$0]  (!%p3087_p12), %s2624_s9, 128, %s249_s30, %s238_s24  }
  0x87   : > { %257 = sbr.rel (%p3088_p6) target bundleno = 961 (0x3c1), region = 36  ;;  %s260_s22 = scalar_lea.sflag (!%p3088_p6), [#allocation3], %s2647_s14 }
  0x88   : > { %s2650_s6 = smul.u32 (!%p3088_p6), 96, %s2647_s14 }
  0x8a   : > { %s2654_s29 = scalar_lea.vmem (!%p3088_p6), [#allocation2], %s2650_s6 }
  0x8e   : > { %2364 = dma.done.wait (%p3089_p13), %s260_s22, 1536  }
  0x8f   : > { %2366 = vsyncadd (%p3089_p13), %s260_s22, 4294965760  ;;  %s268_s5 = sand.u32 1, %s2452_s19   ;;  %s2662_s9 = scalar_lea.vmem [#allocation5], %s2650_s6 }
  0x90   : > { %s269_s10 = scalar_lea.sflag [#allocation6], %s268_s5 }
  0x91   : > { %2368 = dma.done.wait (%p3089_p13), %s269_s10, 3072  }
  0x92   : > { %2370 = vsyncadd (%p3089_p13), %s269_s10, 4294964224  ;;  %s1856_s30 = sshll.u32 %s2647_s14, 3  ;;  %s2670_s24 = scalar_lea.vmem [#allocation7], %s2650_s6 }
  0x93   : > { %s287_s11 = scalar_lea.sflag [#allocation9], %s2647_s14  ;;  %s2673_s12 = scalar_lea.vmem [#allocation8], %s1856_s30 }
  0x94   : > { %2372 = dma.done.wait (%p3089_p13), %s287_s11, 128  }
  0x95   : > { %2374 = vsyncadd (%p3089_p13), %s287_s11, 4294967168  ;;  %v2401_v0 = vmov 0.0   ;;  %vm2402_vm0 = vmmov 0   ;;  %v343_v1 = vld [vmem:[%s2662_s9] sm:$0xff]  ;;  %vm404_vm1 = vcmask 523264   ;;  %v344_v2 = vld [vmem:[%s2662_s9 + $0x8] sm:$0xff] }
  0x96   : > { %1932 = vmatprep.subr.bf16.mxu0 %v2401_v0  ;;  %1938 = vmatprep.subr.bf16.mxu1 %v2401_v0  ;;  %v331_v3 = vld [vmem:[%s2654_s29] sm:$0xff]  ;;  %v392_v4 = vpack.c.bf16 %v343_v1, %v343_v1  ;;  %v393_v5 = vpack.c.bf16 %v344_v2, %v344_v2  ;;  %v332_v6 = vld [vmem:[%s2654_s29 + $0x8] sm:$0xff]  ;;  %v345_v7 = vld [vmem:[%s2662_s9 + $0x10] sm:$0xff]  ;;  %vm972_vm3 = vcmask 64512   ;;  %vm1132_vm4 = vcmask 1043456   ;;  %s2984_s25 = scalar_lea.vmem [#allocation10], %s2650_s6 }
  0x97   : > { %1934 = vmatprep.mubr.msk.bf16.mxu0 %vm2402_vm0, %v2401_v0  ;;  %1940 = vmatprep.mubr.msk.bf16.mxu1 %vm2402_vm0, %v2401_v0  ;;  %v346_v8 = vld [vmem:[%s2662_s9 + $0x18] sm:$0xff]  ;;  %v368_v11 = vmul.f32 0.125, %v331_v3  ;;  %v369_v12 = vmul.f32 0.125, %v332_v6  ;;  %v394_v13 = vpack.c.bf16 %v345_v7, %v345_v7  ;;  %v333_v17 = vld [vmem:[%s2654_s29 + $0x10] sm:$0xff]  ;;  %v347_v21 = vld [vmem:[%s2662_s9 + $0x20] sm:$0xff]  ;;  %s2083_s13 = smul.u32 1536, %s2452_s19 }
  0x98   : > { %v409_v9 = vsel %vm404_vm1, %v392_v4, 0  ;;  %v455_v10 = vsel %vm404_vm1, %v393_v5, 0  ;;  %v395_v14 = vpack.c.bf16 %v346_v8, %v346_v8  ;;  %v334_v18 = vld [vmem:[%s2654_s29 + $0x18] sm:$0xff]  ;;  %v348_v22 = vld [vmem:[%s2662_s9 + $0x28] sm:$0xff]  ;;  %v370_v23 = vmul.f32 0.125, %v333_v17  ;;  %v335_v29 = vld [vmem:[%s2654_s29 + $0x20] sm:$0xff] }
  0x99   : > { %1933 = vmatpush3.bf16.xpose.msra.mxu0 %v409_v9  ;;  %1939 = vmatpush3.bf16.xpose.msra.mxu1 %v455_v10  ;;  %v380_v15 = vpack.c.bf16 %v368_v11, %v368_v11  ;;  %v381_v16 = vpack.c.bf16 %v369_v12, %v369_v12  ;;  %v501_v19 = vsel %vm404_vm1, %v394_v13, 0  ;;  %v371_v24 = vmul.f32 0.125, %v334_v18  ;;  %v336_v30 = vld [vmem:[%s2654_s29 + $0x28] sm:$0xff]  ;;  %v349_v33 = vld [vmem:[%s2662_s9 + $0x30] sm:$0xff]  ;;  %v350_v34 = vld [vmem:[%s2662_s9 + $0x38] sm:$0xff]  ;;  %s1708_s23 = sshll.u32 %s2984_s25, 4  ;;  %s3013_s28 = scalar_lea.hbm %s3065_s4, %s2083_s13  ;;  %s3015_s23 = int_to_ptr.vmem [resolvable:$true] %s1708_s23 }
  0x9a   : > { %1944 = vmatprep.subr.bf16.mxu0 %v2401_v0  ;;  %1950 = vmatprep.subr.bf16.mxu1 %v2401_v0  ;;  %v547_v20 = vsel %vm404_vm1, %v395_v14, 0  ;;  %v396_v25 = vpack.c.bf16 %v347_v21, %v347_v21  ;;  %v397_v26 = vpack.c.bf16 %v348_v22, %v348_v22  ;;  %v382_v27 = vpack.c.bf16 %v370_v23, %v370_v23  ;;  %v337_v41 = vld [vmem:[%s2654_s29 + $0x30] sm:$0xff]  ;;  %v338_v42 = vld [vmem:[%s2654_s29 + $0x38] sm:$0xff]  ;;  %v351_v45 = vld [vmem:[%s2662_s9 + $0x40] sm:$0xff]  ;;  %s1695_s19 = scalar_lea.sflag [#allocation4], %s2647_s14  ;;  %s2319_s7 = scalar_lea.vmem %s3015_s23, 1536 }
  0x9b   : > { %v383_v28 = vpack.c.bf16 %v371_v24, %v371_v24  ;;  %v372_v35 = vmul.f32 0.125, %v335_v29  ;;  %v373_v36 = vmul.f32 0.125, %v336_v30  ;;  %v398_v37 = vpack.c.bf16 %v349_v33, %v349_v33  ;;  %v352_v46 = vld [vmem:[%s2662_s9 + $0x48] sm:$0xff]  ;;  %v339_v53 = vld [vmem:[%s2654_s29 + $0x40] sm:$0xff]  ;;  %v353_v57 = vld [vmem:[%s2662_s9 + $0x50] sm:$0xff]  ;;  %p2320_p2 = scmp.ne.s32.totalorder %s3015_s23, %s2319_s7  ;;  %p3090_p0 = scmp.ne.s32.totalorder %s3077_s26, 0 }
  0x9c   : > { %v593_v31 = vsel %vm404_vm1, %v396_v25, 0  ;;  %v639_v32 = vsel %vm404_vm1, %v397_v26, 0  ;;  %v399_v38 = vpack.c.bf16 %v350_v34, %v350_v34  ;;  %v374_v47 = vmul.f32 0.125, %v337_v41  ;;  %v340_v54 = vld [vmem:[%s2654_s29 + $0x48] sm:$0xff]  ;;  %v354_v58 = vld [vmem:[%s2662_s9 + $0x58] sm:$0xff]  ;;  %v341_v2 = vld [vmem:[%s2654_s29 + $0x50] sm:$0xff] }
  0x9d   : > { %v384_v39 = vpack.c.bf16 %v372_v35, %v372_v35  ;;  %v385_v40 = vpack.c.bf16 %v373_v36, %v373_v36  ;;  %v685_v43 = vsel %vm404_vm1, %v398_v37, 0  ;;  %v375_v48 = vmul.f32 0.125, %v338_v42  ;;  %v342_v3 = vld [vmem:[%s2654_s29 + $0x58] sm:$0xff]  ;;  %v2770_v10 = vld [vmem:[%s2673_s12] sm:$0xff]  ;;  %p2321_p8 = pnand %p2320_p2, %p3090_p0  ;;  %s2403_s0 = smov [#allocation10]  }
  0x9e   : > { %v731_v44 = vsel %vm404_vm1, %v399_v38, 0  ;;  %v400_v49 = vpack.c.bf16 %v351_v45, %v351_v45  ;;  %v401_v50 = vpack.c.bf16 %v352_v46, %v352_v46  ;;  %v386_v51 = vpack.c.bf16 %v374_v47, %v374_v47  ;;  %s2323_s8 = sshll.u32 %s2403_s0, 4  ;;  %s2324_s8 = int_to_ptr.vmem [resolvable:$false] %s2323_s8 }
  0x9f   : > { %v387_v52 = vpack.c.bf16 %v375_v48, %v375_v48  ;;  %v376_v59 = vmul.f32 0.125, %v339_v53  ;;  %v377_v60 = vmul.f32 0.125, %v340_v54  ;;  %v402_v61 = vpack.c.bf16 %v353_v57, %v353_v57  ;;  %p2322_p10 = pneg %p2321_p8  ;;  %s2325_s6 = scalar_lea.vmem %s2324_s8, 3072 }
  0xa0   : > { %1935 = vmatmul.mubr.msk.bf16.vlgmr.msra.gmra.mrb[0].mxu0 %vm404_vm1, %v380_v15  ;;  %1941 = vmatmul.mubr.msk.bf16.vlgmr.msra.gmra.mrb[0].mxu1 %vm404_vm1, %v381_v16  ;;  %v777_v55 = vsel %vm404_vm1, %v400_v49, 0  ;;  %v823_v56 = vsel %vm404_vm1, %v401_v50, 0  ;;  %v403_v62 = vpack.c.bf16 %v354_v58, %v354_v58  ;;  %v378_v6 = vmul.f32 0.125, %v341_v2  ;;  %p2326_p11 = scmp.lt.s32.totalorder %s3015_s23, %s2324_s8  ;;  %p2327_p4 = scmp.lt.s32.totalorder %s2325_s6, %s2319_s7 }
  0xa1   : > { %1945 = vmatpush3.bf16.xpose.msra.mxu0 %v501_v19  ;;  %1951 = vmatpush3.bf16.xpose.msra.mxu1 %v547_v20  ;;  %v388_v63 = vpack.c.bf16 %v376_v59, %v376_v59  ;;  %v389_v1 = vpack.c.bf16 %v377_v60, %v377_v60  ;;  %v869_v4 = vsel %vm404_vm1, %v402_v61, 0  ;;  %v379_v7 = vmul.f32 0.125, %v342_v3 }
  0xa2   : > { %1946 = vmatprep.mubr.msk.bf16.mxu0 %vm2402_vm0, %v2401_v0  ;;  %1952 = vmatprep.mubr.msk.bf16.mxu1 %vm2402_vm0, %v2401_v0  ;;  %v915_v5 = vsel %vm404_vm1, %v403_v62, 0  ;;  %v390_v8 = vpack.c.bf16 %v378_v6, %v378_v6  ;;  %vm957_vm2 = vcmp.gt.s32.totalorder %v2770_v10, 0  ;;  %p2328_p3 = por %p2327_p4, %p2326_p11 }
  0xa3   : > { %1956 = vmatprep.subr.bf16.mxu0 %v2401_v0  ;;  %1962 = vmatprep.subr.bf16.mxu1 %v2401_v0  ;;  %v391_v9 = vpack.c.bf16 %v379_v7, %v379_v7 }
  0xa4   : > { %p2329_p5 = pnand %p2328_p3, %p2322_p10 }
  0xa8   : > { %1947 = vmatmul.mubr.msk.bf16.vlgmr.msra.gmra.mrb[4].mxu0 %vm404_vm1, %v382_v27  ;;  %1953 = vmatmul.mubr.msk.bf16.vlgmr.msra.gmra.mrb[4].mxu1 %vm404_vm1, %v383_v28 }
  0xa9   : > { %1957 = vmatpush3.bf16.xpose.msra.mxu0 %v593_v31  ;;  %1963 = vmatpush3.bf16.xpose.msra.mxu1 %v639_v32 }
  0xaa   : > { %1958 = vmatprep.mubr.msk.bf16.mxu0 %vm2402_vm0, %v2401_v0  ;;  %1964 = vmatprep.mubr.msk.bf16.mxu1 %vm2402_vm0, %v2401_v0 }
  0xab   : > { %1968 = vmatprep.subr.bf16.mxu0 %v2401_v0  ;;  %1974 = vmatprep.subr.bf16.mxu1 %v2401_v0 }
  0xb0   : > { %1959 = vmatmul.mubr.msk.bf16.vlgmr.msra.gmra.mrb[8].mxu0 %vm404_vm1, %v384_v39  ;;  %1965 = vmatmul.mubr.msk.bf16.vlgmr.msra.gmra.mrb[8].mxu1 %vm404_vm1, %v385_v40 }
  0xb1   : > { %1969 = vmatpush3.bf16.xpose.msra.mxu0 %v685_v43  ;;  %1975 = vmatpush3.bf16.xpose.msra.mxu1 %v731_v44 }
  0xb2   : > { %1970 = vmatprep.mubr.msk.bf16.mxu0 %vm2402_vm0, %v2401_v0  ;;  %1976 = vmatprep.mubr.msk.bf16.mxu1 %vm2402_vm0, %v2401_v0 }
  0xb3   : > { %1980 = vmatprep.subr.bf16.mxu0 %v2401_v0  ;;  %1986 = vmatprep.subr.bf16.mxu1 %v2401_v0 }
  0xb8   : > { %1971 = vmatmul.mubr.msk.bf16.vlgmr.msra.gmra.mrb[12].mxu0 %vm404_vm1, %v386_v51  ;;  %1977 = vmatmul.mubr.msk.bf16.vlgmr.msra.gmra.mrb[12].mxu1 %vm404_vm1, %v387_v52 }
  0xb9   : > { %1981 = vmatpush3.bf16.xpose.msra.mxu0 %v777_v55  ;;  %1987 = vmatpush3.bf16.xpose.msra.mxu1 %v823_v56 }
  0xba   : > { %1982 = vmatprep.mubr.msk.bf16.mxu0 %vm2402_vm0, %v2401_v0  ;;  %1988 = vmatprep.mubr.msk.bf16.mxu1 %vm2402_vm0, %v2401_v0 }
  0xbb   : > { %1992 = vmatprep.subr.bf16.mxu0 %v2401_v0  ;;  %1998 = vmatprep.subr.bf16.mxu1 %v2401_v0 }
  0xc0   : > { %1983 = vmatmul.mubr.msk.bf16.vlgmr.msra.gmra.mrb[16].mxu0 %vm404_vm1, %v388_v63  ;;  %1989 = vmatmul.mubr.msk.bf16.vlgmr.msra.gmra.mrb[16].mxu1 %vm404_vm1, %v389_v1 }
  0xc1   : > { %1993 = vmatpush3.bf16.xpose.msra.mxu0 %v869_v4  ;;  %1999 = vmatpush3.bf16.xpose.msra.mxu1 %v915_v5 }
  0xc2   : > { %1994 = vmatprep.mubr.msk.bf16.mxu0 %vm2402_vm0, %v2401_v0  ;;  %2000 = vmatprep.mubr.msk.bf16.mxu1 %vm2402_vm0, %v2401_v0 }
  0xc3   : > { %2004 = vmatprep.subr.bf16.mxu0 %v2401_v0  ;;  %2010 = vmatprep.subr.bf16.mxu1 %v2401_v0 }
  0xc8   : > { %1995 = vmatmul.mubr.msk.bf16.vlgmr.msra.gmra.mrb[20].mxu0 %vm404_vm1, %v390_v8  ;;  %2001 = vmatmul.mubr.msk.bf16.vlgmr.msra.gmra.mrb[20].mxu1 %vm404_vm1, %v391_v9 }
  0xc9   : > { %2006 = vmatprep.mubr.msk.bf16.mxu0 %vm2402_vm0, %v2401_v0  ;;  %2012 = vmatprep.mubr.msk.bf16.mxu1 %vm2402_vm0, %v2401_v0 }
 0x173   : > { %v445_v11 = vpop.f32.mrb[0].mxu0  ;;  %v491_v12 = vpop.f32.mrb[0].mxu1 }
 0x174   : > { %v2775_v13 = vsel %vm957_vm2, -1e+09, %v445_v11  ;;  %v1936_v14 = vpop.f32.mrb[1].mxu0  ;;  %v2779_v15 = vsel %vm957_vm2, -1e+09, %v491_v12  ;;  %v1942_v16 = vpop.f32.mrb[1].mxu1 }
 0x175   : > { %v448_v17 = vpop.f32.mrb[2].mxu0  ;;  %v973_v18 = vsel %vm972_vm3, %v2775_v13, -inf  ;;  %v494_v19 = vpop.f32.mrb[2].mxu1  ;;  %v976_v22 = vsel %vm972_vm3, %v2779_v15, -inf }
 0x176   : > { %974 = vmax.xlane.f32.xlu0 %v973_v18  ;;  %v1937_v20 = vpop.f32.mrb[3].mxu0  ;;  %v1943_v21 = vpop.f32.mrb[3].mxu1 }
 0x17a   : > { %977 = vmax.xlane.f32.xlu0 %v976_v22 }
 0x17b   : > { %v537_v23 = vpop.f32.mrb[4].mxu0  ;;  %v583_v24 = vpop.f32.mrb[4].mxu1 }
 0x17c   : > { %v2787_v25 = vsel %vm957_vm2, -1e+09, %v537_v23  ;;  %v1948_v26 = vpop.f32.mrb[5].mxu0  ;;  %v2791_v27 = vsel %vm957_vm2, -1e+09, %v583_v24  ;;  %v1954_v28 = vpop.f32.mrb[5].mxu1 }
 0x17d   : > { %v540_v29 = vpop.f32.mrb[6].mxu0  ;;  %v979_v30 = vsel %vm972_vm3, %v2787_v25, -inf  ;;  %v586_v31 = vpop.f32.mrb[6].mxu1  ;;  %v982_v34 = vsel %vm972_vm3, %v2791_v27, -inf }
 0x17e   : > { %980 = vmax.xlane.f32.xlu1 %v979_v30  ;;  %v1949_v32 = vpop.f32.mrb[7].mxu0  ;;  %v1955_v33 = vpop.f32.mrb[7].mxu1 }
 0x182   : > { %983 = vmax.xlane.f32.xlu1 %v982_v34 }
 0x183   : > { %v629_v35 = vpop.f32.mrb[8].mxu0  ;;  %v675_v36 = vpop.f32.mrb[8].mxu1 }
 0x184   : > { %v2799_v37 = vsel %vm957_vm2, -1e+09, %v629_v35  ;;  %v2803_v38 = vsel %vm957_vm2, -1e+09, %v675_v36  ;;  %v1966_v39 = vpop.f32.mrb[9].mxu1  ;;  %v1960_v40 = vpop.f32.mrb[9].mxu0 }
 0x185   : > { %v988_v41 = vsel %vm972_vm3, %v2803_v38, -inf  ;;  %v985_v42 = vsel %vm972_vm3, %v2799_v37, -inf  ;;  %v632_v43 = vpop.f32.mrb[10].mxu0  ;;  %v678_v44 = vpop.f32.mrb[10].mxu1 }
 0x186   : > { %989 = vmax.xlane.f32.xlu1 %v988_v41  ;;  %986 = vmax.xlane.f32.xlu0 %v985_v42  ;;  %v1961_v45 = vpop.f32.mrb[11].mxu0  ;;  %v1967_v46 = vpop.f32.mrb[11].mxu1 }
 0x18b   : > { %v721_v47 = vpop.f32.mrb[12].mxu0  ;;  %v767_v48 = vpop.f32.mrb[12].mxu1 }
 0x18c   : > { %v2811_v49 = vsel %vm957_vm2, -1e+09, %v721_v47  ;;  %v2815_v50 = vsel %vm957_vm2, -1e+09, %v767_v48  ;;  %v1978_v51 = vpop.f32.mrb[13].mxu1  ;;  %v1972_v52 = vpop.f32.mrb[13].mxu0 }
 0x18d   : > { %v994_v53 = vsel %vm972_vm3, %v2815_v50, -inf  ;;  %v991_v54 = vsel %vm972_vm3, %v2811_v49, -inf  ;;  %v724_v55 = vpop.f32.mrb[14].mxu0  ;;  %v770_v56 = vpop.f32.mrb[14].mxu1 }
 0x18e   : > { %995 = vmax.xlane.f32.xlu1 %v994_v53  ;;  %992 = vmax.xlane.f32.xlu0 %v991_v54  ;;  %v1973_v57 = vpop.f32.mrb[15].mxu0  ;;  %v1979_v58 = vpop.f32.mrb[15].mxu1 }
 0x193   : > { %v813_v59 = vpop.f32.mrb[16].mxu0  ;;  %v859_v60 = vpop.f32.mrb[16].mxu1 }
 0x194   : > { %v2823_v61 = vsel %vm957_vm2, -1e+09, %v813_v59  ;;  %v2827_v62 = vsel %vm957_vm2, -1e+09, %v859_v60  ;;  %v1990_v63 = vpop.f32.mrb[17].mxu1  ;;  %v1984_v1 = vpop.f32.mrb[17].mxu0 }
 0x195   : > { %v1000_v2 = vsel %vm972_vm3, %v2827_v62, -inf  ;;  %v997_v3 = vsel %vm972_vm3, %v2823_v61, -inf  ;;  %v816_v4 = vpop.f32.mrb[18].mxu0  ;;  %v862_v5 = vpop.f32.mrb[18].mxu1 }
 0x196   : > { %1001 = vmax.xlane.f32.xlu1 %v1000_v2  ;;  %998 = vmax.xlane.f32.xlu0 %v997_v3  ;;  %v1985_v6 = vpop.f32.mrb[19].mxu0  ;;  %v1991_v7 = vpop.f32.mrb[19].mxu1 }
 0x19b   : > { %v905_v8 = vpop.f32.mrb[20].mxu0  ;;  %v951_v9 = vpop.f32.mrb[20].mxu1 }
 0x19c   : > { %v2835_v11 = vsel %vm957_vm2, -1e+09, %v905_v8  ;;  %v2839_v12 = vsel %vm957_vm2, -1e+09, %v951_v9  ;;  %v2002_v14 = vpop.f32.mrb[21].mxu1  ;;  %v1996_v16 = vpop.f32.mrb[21].mxu0 }
 0x19d   : > { %v1006_v17 = vsel %vm972_vm3, %v2839_v12, -inf  ;;  %v1003_v18 = vsel %vm972_vm3, %v2835_v11, -inf  ;;  %v908_v19 = vpop.f32.mrb[22].mxu0  ;;  %v954_v20 = vpop.f32.mrb[22].mxu1 }
 0x19e   : > { %1007 = vmax.xlane.f32.xlu1 %v1006_v17  ;;  %1004 = vmax.xlane.f32.xlu0 %v1003_v18  ;;  %v1997_v21 = vpop.f32.mrb[23].mxu0  ;;  %v2003_v22 = vpop.f32.mrb[23].mxu1  ;;  %v356_v17 = vld [vmem:[%s2670_s24 + $0x8] sm:$0xff] }
 0x19f   : > { %v1118_v18 = vpack.c.bf16 %v356_v17, %v356_v17 }
 0x203   : > { %v975_v23 = vpop.xlane.xlu0 %974 }
 0x204   : > { %v1009_v24 = vsub.f32 %v2775_v13, %v975_v23 }
 0x206   : > { %v1021_v10 = vmul.f32 1.442695, %v1009_v24 }
 0x207   : > { %v978_v26 = vpop.xlane.xlu0 %977 }
 0x208   : > { %2151 = vpow2.f32 %v1021_v10  ;;  %v1010_v28 = vsub.f32 %v2779_v15, %v978_v26 }
 0x20a   : > { %v1023_v29 = vmul.f32 1.442695, %v1010_v28 }
 0x20b   : > { %v981_v30 = vpop.xlane.xlu1 %980 }
 0x20c   : > { %2153 = vpow2.f32 %v1023_v29  ;;  %v1011_v31 = vsub.f32 %v2787_v25, %v981_v30  ;;  %v357_v29 = vld [vmem:[%s2670_s24 + $0x10] sm:$0xff] }
 0x20e   : > { %v1025_v32 = vmul.f32 1.442695, %v1011_v31  ;;  %v1119_v31 = vpack.c.bf16 %v357_v29, %v357_v29 }
 0x20f   : > { %v984_v33 = vpop.xlane.xlu1 %983 }
 0x210   : > { %2155 = vpow2.f32 %v1025_v32  ;;  %v1012_v34 = vsub.f32 %v2791_v27, %v984_v33  ;;  %v358_v33 = vld [vmem:[%s2670_s24 + $0x18] sm:$0xff] }
 0x212   : > { %v2849_v35 = vpop.eup %2151  ;;  %v1027_v36 = vmul.f32 1.442695, %v1012_v34 }
 0x213   : > { %v990_v39 = vpop.xlane.xlu1 %989  ;;  %v987_v13 = vpop.xlane.xlu0 %986  ;;  %v1045_v40 = vsel %vm972_vm3, %v2849_v35, 0.0 }
 0x214   : > { %2157 = vpow2.f32 %v1027_v36  ;;  %v1014_v15 = vsub.f32 %v2803_v38, %v990_v39  ;;  %v1013_v41 = vsub.f32 %v2799_v37, %v987_v13  ;;  %1046 = vadd.xlane.f32.xlu0 %v1045_v40  ;;  %v1226_v13 = vsel %vm1132_vm4, %v1119_v31, 0  ;;  %v366_v31 = vld [vmem:[%s2670_s24 + $0x58] sm:$0xff] }
 0x215   : > { %v1120_v40 = vpack.c.bf16 %v358_v33, %v358_v33 }
 0x216   : > { %v2855_v25 = vpop.eup %2153  ;;  %v1031_v42 = vmul.f32 1.442695, %v1014_v15  ;;  %v1029_v43 = vmul.f32 1.442695, %v1013_v41  ;;  %v359_v41 = vld [vmem:[%s2670_s24 + $0x20] sm:$0xff] }
 0x217   : > { %v1048_v27 = vsel %vm972_vm3, %v2855_v25, 0.0 }
 0x218   : > { %2159 = vpow2.f32 %v1031_v42  ;;  %1049 = vadd.xlane.f32.xlu1 %v1048_v27 }
 0x219   : > { %2161 = vpow2.f32 %v1029_v43 }
 0x21a   : > { %v2859_v44 = vpop.eup %2155 }
 0x21b   : > { %v996_v45 = vpop.xlane.xlu1 %995  ;;  %v993_v46 = vpop.xlane.xlu0 %992  ;;  %v1051_v38 = vsel %vm972_vm3, %v2859_v44, 0.0 }
 0x21c   : > { %v1016_v37 = vsub.f32 %v2815_v50, %v996_v45  ;;  %v1015_v47 = vsub.f32 %v2811_v49, %v993_v46  ;;  %1052 = vadd.xlane.f32.xlu0 %v1051_v38  ;;  %v1272_v45 = vsel %vm1132_vm4, %v1120_v40, 0  ;;  %v1121_v46 = vpack.c.bf16 %v359_v41, %v359_v41 }
 0x21e   : > { %v2865_v48 = vpop.eup %2157  ;;  %v1035_v51 = vmul.f32 1.442695, %v1016_v37  ;;  %v1033_v52 = vmul.f32 1.442695, %v1015_v47  ;;  %v360_v37 = vld [vmem:[%s2670_s24 + $0x28] sm:$0xff] }
 0x21f   : > { %v1054_v53 = vsel %vm972_vm3, %v2865_v48, 0.0 }
 0x220   : > { %2163 = vpow2.f32 %v1035_v51  ;;  %1055 = vadd.xlane.f32.xlu1 %v1054_v53  ;;  %v1318_v51 = vsel %vm1132_vm4, %v1121_v46, 0 }
 0x221   : > { %2165 = vpow2.f32 %v1033_v52  ;;  %v1122_v52 = vpack.c.bf16 %v360_v37, %v360_v37 }
 0x222   : > { %v2869_v54 = vpop.eup %2159 }
 0x223   : > { %v2871_v55 = vpop.eup %2161  ;;  %v1002_v56 = vpop.xlane.xlu1 %1001  ;;  %v1060_v49 = vsel %vm972_vm3, %v2869_v54, 0.0 }
 0x224   : > { %v999_v57 = vpop.xlane.xlu0 %998  ;;  %v1018_v50 = vsub.f32 %v2827_v62, %v1002_v56  ;;  %1061 = vadd.xlane.f32.xlu1 %v1060_v49  ;;  %v1057_v59 = vsel %vm972_vm3, %v2871_v55, 0.0 }
 0x225   : > { %v1017_v58 = vsub.f32 %v2823_v61, %v999_v57  ;;  %1058 = vadd.xlane.f32.xlu0 %v1057_v59  ;;  %v355_v61 = vld [vmem:[%s2670_s24] sm:$0xff] }
 0x226   : > { %v1039_v60 = vmul.f32 1.442695, %v1018_v50  ;;  %v1117_v8 = vpack.c.bf16 %v355_v61, %v355_v61 }
 0x227   : > { %v1037_v63 = vmul.f32 1.442695, %v1017_v58  ;;  %v1364_v58 = vsel %vm1132_vm4, %v1122_v52, 0 }
 0x228   : > { %2167 = vpow2.f32 %v1039_v60  ;;  %v1134_v16 = vsel %vm1132_vm4, %v1117_v8, 0 }
 0x229   : > { %2169 = vpow2.f32 %v1037_v63  ;;  %2005 = vmatpush3.bf16.msra.mxu0 %v1134_v16  ;;  %v364_v16 = vld [vmem:[%s2670_s24 + $0x48] sm:$0xff] }
 0x22a   : > { %v2879_v1 = vpop.eup %2163  ;;  %2016 = vmatprep.subr.bf16.mxu0 %v2401_v0 }
 0x22b   : > { %v2881_v2 = vpop.eup %2165  ;;  %v1008_v3 = vpop.xlane.xlu1 %1007  ;;  %v1066_v62 = vsel %vm972_vm3, %v2879_v1, 0.0 }
 0x22c   : > { %v1005_v4 = vpop.xlane.xlu0 %1004  ;;  %v1020_v5 = vsub.f32 %v2839_v12, %v1008_v3  ;;  %1067 = vadd.xlane.f32.xlu1 %v1066_v62  ;;  %v1063_v7 = vsel %vm972_vm3, %v2881_v2, 0.0 }
 0x22d   : > { %v1019_v6 = vsub.f32 %v2835_v11, %v1005_v4  ;;  %1064 = vadd.xlane.f32.xlu0 %v1063_v7  ;;  %v1180_v11 = vsel %vm1132_vm4, %v1118_v18, 0  ;;  %v363_v7 = vld [vmem:[%s2670_s24 + $0x40] sm:$0xff] }
 0x22e   : > { %v1043_v9 = vmul.f32 1.442695, %v1020_v5  ;;  %2011 = vmatpush3.bf16.msra.mxu1 %v1180_v11 }
 0x22f   : > { %v1041_v14 = vmul.f32 1.442695, %v1019_v6  ;;  %2022 = vmatprep.subr.bf16.mxu1 %v2401_v0 }
 0x230   : > { %2171 = vpow2.f32 %v1043_v9 }
 0x231   : > { %2173 = vpow2.f32 %v1041_v14  ;;  %v1125_v14 = vpack.c.bf16 %v363_v7, %v363_v7 }
 0x232   : > { %v2893_v12 = vpop.eup %2167 }
 0x233   : > { %v2896_v19 = vpop.eup %2169  ;;  %v1072_v20 = vsel %vm972_vm3, %v2893_v12, 0.0 }
 0x234   : > { %1073 = vadd.xlane.f32.xlu1 %v1072_v20  ;;  %v1069_v21 = vsel %vm972_vm3, %v2896_v19, 0.0  ;;  %v1126_v20 = vpack.c.bf16 %v364_v16, %v364_v16 }
 0x235   : > { %1070 = vadd.xlane.f32.xlu0 %v1069_v21 }
 0x236   : > { %v1548_v29 = vsel %vm1132_vm4, %v1126_v20, 0 }
 0x23a   : > { %v2903_v22 = vpop.eup %2171 }
 0x23b   : > { %v2905_v23 = vpop.eup %2173  ;;  %v1078_v24 = vsel %vm972_vm3, %v2903_v22, 0.0 }
 0x23c   : > { %1079 = vadd.xlane.f32.xlu1 %v1078_v24  ;;  %v1075_v10 = vsel %vm972_vm3, %v2905_v23, 0.0  ;;  %v1502_v24 = vsel %vm1132_vm4, %v1125_v14, 0 }
 0x23d   : > { %1076 = vadd.xlane.f32.xlu0 %v1075_v10 }
 0x2a1   : > { %v1047_v26 = vpop.xlane.xlu0 %1046 }
 0x2a2   : > { %2175 = vrcp.f32 %v1047_v26  ;;  %v365_v26 = vld [vmem:[%s2670_s24 + $0x50] sm:$0xff] }
 0x2a5   : > { %v1050_v28 = vpop.xlane.xlu1 %1049 }
 0x2a6   : > { %2177 = vrcp.f32 %v1050_v28 }
 0x2a9   : > { %v1053_v30 = vpop.xlane.xlu0 %1052 }
 0x2aa   : > { %2179 = vrcp.f32 %v1053_v30  ;;  %v1127_v30 = vpack.c.bf16 %v365_v26, %v365_v26 }
 0x2ac   : > { %v2176_v32 = vpop.eup %2175 }
 0x2ad   : > { %v1093_v34 = vmul.f32 %v2176_v32, %v2849_v35  ;;  %v1056_v36 = vpop.xlane.xlu1 %1055 }
 0x2ae   : > { %2181 = vrcp.f32 %v1056_v36  ;;  %v1128_v36 = vpack.c.bf16 %v366_v31, %v366_v31 }
 0x2af   : > { %v1105_v39 = vpack.c.bf16 %v1093_v34, %v1093_v34 }
 0x2b0   : > { %v2178_v15 = vpop.eup %2177 }
 0x2b1   : > { %v1094_v42 = vmul.f32 %v2178_v15, %v2855_v25  ;;  %v1062_v43 = vpop.xlane.xlu1 %1061  ;;  %2007 = vmatmul.mubr.msk.bf16.vlgmr.msra.gmra.mrb[24].mxu0 %vm972_vm3, %v1105_v39  ;;  %v1640_v15 = vsel %vm1132_vm4, %v1128_v36, 0 }
 0x2b2   : > { %2183 = vrcp.f32 %v1062_v43  ;;  %v1059_v27 = vpop.xlane.xlu0 %1058  ;;  %2017 = vmatpush3.bf16.msra.mxu0 %v1226_v13  ;;  %2018 = vmatprep.mubr.msk.bf16.mxu0 %vm2402_vm0, %v2401_v0  ;;  %v1594_v13 = vsel %vm1132_vm4, %v1127_v30, 0 }
 0x2b3   : > { %2185 = vrcp.f32 %v1059_v27  ;;  %v1106_v35 = vpack.c.bf16 %v1094_v42, %v1094_v42  ;;  %2028 = vmatprep.subr.bf16.mxu0 %v2401_v0 }
 0x2b4   : > { %v2180_v38 = vpop.eup %2179 }
 0x2b5   : > { %v1095_v25 = vmul.f32 %v2180_v38, %v2859_v44  ;;  %2013 = vmatmul.mubr.msk.bf16.vlgmr.msra.gmra.mrb[24].mxu1 %vm972_vm3, %v1106_v35  ;;  %v361_v44 = vld [vmem:[%s2670_s24 + $0x30] sm:$0xff] }
 0x2b6   : > { %2023 = vmatpush3.bf16.msra.mxu1 %v1272_v45  ;;  %2024 = vmatprep.mubr.msk.bf16.mxu1 %vm2402_vm0, %v2401_v0  ;;  %v1123_v60 = vpack.c.bf16 %v361_v44, %v361_v44 }
 0x2b7   : > { %v1107_v47 = vpack.c.bf16 %v1095_v25, %v1095_v25  ;;  %2034 = vmatprep.subr.bf16.mxu1 %v2401_v0 }
 0x2b8   : > { %v2182_v53 = vpop.eup %2181  ;;  %v1410_v5 = vsel %vm1132_vm4, %v1123_v60, 0 }
 0x2b9   : > { %v1096_v56 = vmul.f32 %v2182_v53, %v2865_v48  ;;  %v1068_v57 = vpop.xlane.xlu1 %1067  ;;  %2019 = vmatmul.mubr.msk.bf16.vlgmr.msra.gmra.mrb[28].mxu0 %vm972_vm3, %v1107_v47  ;;  %v362_v48 = vld [vmem:[%s2670_s24 + $0x38] sm:$0xff] }
 0x2ba   : > { %2187 = vrcp.f32 %v1068_v57  ;;  %v1065_v49 = vpop.xlane.xlu0 %1064  ;;  %2029 = vmatpush3.bf16.msra.mxu0 %v1318_v51  ;;  %2030 = vmatprep.mubr.msk.bf16.mxu0 %vm2402_vm0, %v2401_v0  ;;  %v1124_v62 = vpack.c.bf16 %v362_v48, %v362_v48 }
 0x2bb   : > { %2189 = vrcp.f32 %v1065_v49  ;;  %v1108_v50 = vpack.c.bf16 %v1096_v56, %v1096_v56  ;;  %2040 = vmatprep.subr.bf16.mxu0 %v2401_v0 }
 0x2bc   : > { %v2184_v59 = vpop.eup %2183  ;;  %v1456_v9 = vsel %vm1132_vm4, %v1124_v62, 0 }
 0x2bd   : > { %v2186_v63 = vpop.eup %2185  ;;  %2025 = vmatmul.mubr.msk.bf16.vlgmr.msra.gmra.mrb[28].mxu1 %vm972_vm3, %v1108_v50  ;;  %v1098_v4 = vmul.f32 %v2184_v59, %v2869_v54 }
 0x2be   : > { %v1097_v3 = vmul.f32 %v2186_v63, %v2871_v55  ;;  %2035 = vmatpush3.bf16.msra.mxu1 %v1364_v58  ;;  %2036 = vmatprep.mubr.msk.bf16.mxu1 %vm2402_vm0, %v2401_v0 }
 0x2bf   : > { %2046 = vmatprep.subr.bf16.mxu1 %v2401_v0  ;;  %v1110_v55 = vpack.c.bf16 %v1098_v4, %v1098_v4 }
 0x2c0   : > { %v1109_v61 = vpack.c.bf16 %v1097_v3, %v1097_v3 }
 0x2c1   : > { %v1074_v6 = vpop.xlane.xlu1 %1073 }
 0x2c2   : > { %2191 = vrcp.f32 %v1074_v6  ;;  %2031 = vmatmul.mubr.msk.bf16.vlgmr.msra.gmra.mrb[32].mxu0 %vm972_vm3, %v1109_v61  ;;  %v1071_v8 = vpop.xlane.xlu0 %1070 }
 0x2c3   : > { %2193 = vrcp.f32 %v1071_v8  ;;  %2041 = vmatpush3.bf16.msra.mxu0 %v1410_v5  ;;  %2042 = vmatprep.mubr.msk.bf16.mxu0 %vm2402_vm0, %v2401_v0 }
 0x2c4   : > { %v2188_v54 = vpop.eup %2187  ;;  %2052 = vmatprep.subr.bf16.mxu0 %v2401_v0 }
 0x2c5   : > { %v2190_v17 = vpop.eup %2189  ;;  %2037 = vmatmul.mubr.msk.bf16.vlgmr.msra.gmra.mrb[32].mxu1 %vm972_vm3, %v1110_v55  ;;  %v1100_v11 = vmul.f32 %v2188_v54, %v2879_v1 }
 0x2c6   : > { %v1099_v18 = vmul.f32 %v2190_v17, %v2881_v2  ;;  %2047 = vmatpush3.bf16.msra.mxu1 %v1456_v9  ;;  %2048 = vmatprep.mubr.msk.bf16.mxu1 %vm2402_vm0, %v2401_v0 }
 0x2c7   : > { %2058 = vmatprep.subr.bf16.mxu1 %v2401_v0  ;;  %v1112_v2 = vpack.c.bf16 %v1100_v11, %v1100_v11 }
 0x2c8   : > { %v1111_v21 = vpack.c.bf16 %v1099_v18, %v1099_v18 }
 0x2c9   : > { %v1080_v10 = vpop.xlane.xlu1 %1079 }
 0x2ca   : > { %2195 = vrcp.f32 %v1080_v10  ;;  %2043 = vmatmul.mubr.msk.bf16.vlgmr.msra.gmra.mrb[36].mxu0 %vm972_vm3, %v1111_v21  ;;  %v1077_v28 = vpop.xlane.xlu0 %1076 }
 0x2cb   : > { %2197 = vrcp.f32 %v1077_v28  ;;  %2053 = vmatpush3.bf16.msra.mxu0 %v1502_v24  ;;  %2054 = vmatprep.mubr.msk.bf16.mxu0 %vm2402_vm0, %v2401_v0 }
 0x2cc   : > { %v2192_v1 = vpop.eup %2191  ;;  %2064 = vmatprep.subr.bf16.mxu0 %v2401_v0 }
 0x2cd   : > { %v2194_v32 = vpop.eup %2193  ;;  %2049 = vmatmul.mubr.msk.bf16.vlgmr.msra.gmra.mrb[36].mxu1 %vm972_vm3, %v1112_v2  ;;  %v1102_v34 = vmul.f32 %v2192_v1, %v2893_v12 }
 0x2ce   : > { %v1101_v33 = vmul.f32 %v2194_v32, %v2896_v19  ;;  %2059 = vmatpush3.bf16.msra.mxu1 %v1548_v29  ;;  %2060 = vmatprep.mubr.msk.bf16.mxu1 %vm2402_vm0, %v2401_v0 }
 0x2cf   : > { %2070 = vmatprep.subr.bf16.mxu1 %v2401_v0  ;;  %v1114_v40 = vpack.c.bf16 %v1102_v34, %v1102_v34 }
 0x2d0   : > { %v1113_v39 = vpack.c.bf16 %v1101_v33, %v1101_v33 }
 0x2d2   : > { %2055 = vmatmul.mubr.msk.bf16.vlgmr.msra.gmra.mrb[40].mxu0 %vm972_vm3, %v1113_v39 }
 0x2d3   : > { %2065 = vmatpush3.bf16.msra.mxu0 %v1594_v13  ;;  %2066 = vmatprep.mubr.msk.bf16.mxu0 %vm2402_vm0, %v2401_v0 }
 0x2d4   : > { %v2196_v19 = vpop.eup %2195 }
 0x2d5   : > { %v2198_v41 = vpop.eup %2197  ;;  %2061 = vmatmul.mubr.msk.bf16.vlgmr.msra.gmra.mrb[40].mxu1 %vm972_vm3, %v1114_v40  ;;  %v1104_v42 = vmul.f32 %v2196_v19, %v2903_v22 }
 0x2d6   : > { %v1103_v12 = vmul.f32 %v2198_v41, %v2905_v23  ;;  %2071 = vmatpush3.bf16.msra.mxu1 %v1640_v15  ;;  %2072 = vmatprep.mubr.msk.bf16.mxu1 %vm2402_vm0, %v2401_v0 }
 0x2d7   : > { %v1116_v27 = vpack.c.bf16 %v1104_v42, %v1104_v42 }
 0x2d8   : > { %v1115_v43 = vpack.c.bf16 %v1103_v12, %v1103_v12 }
 0x2da   : > { %2067 = vmatmul.mubr.msk.bf16.vlgmr.msra.gmra.mrb[44].mxu0 %vm972_vm3, %v1115_v43 }
 0x2dd   : > { %2073 = vmatmul.mubr.msk.bf16.vlgmr.msra.gmra.mrb[44].mxu1 %vm972_vm3, %v1116_v27 }
 0x384   : > { %v1170_v35 = vpop.f32.mrb[24].mxu0 }
 0x385   : > { %1682 = vst.msk [vmem:[%s2984_s25] sm:$0xff] %vm404_vm1, %v1170_v35  ;;  %v2008_v23 = vpop.f32.mrb[25].mxu0 }
 0x386   : > { %v1173_v45 = vpop.f32.mrb[26].mxu0 }
 0x387   : > { %v2009_v0 = vpop.f32.mrb[27].mxu0 }
 0x388   : > { %v1216_v46 = vpop.f32.mrb[24].mxu1 }
 0x389   : > { %1683 = vst.msk [vmem:[%s2984_s25 + $0x8] sm:$0xff] %vm404_vm1, %v1216_v46  ;;  %v2014_v22 = vpop.f32.mrb[25].mxu1 }
 0x38a   : > { %v1219_v38 = vpop.f32.mrb[26].mxu1 }
 0x38b   : > { %v2015_v37 = vpop.f32.mrb[27].mxu1 }
 0x38c   : > { %v1262_v25 = vpop.f32.mrb[28].mxu0 }
 0x38d   : > { %1684 = vst.msk [vmem:[%s2984_s25 + $0x10] sm:$0xff] %vm404_vm1, %v1262_v25  ;;  %v2020_v47 = vpop.f32.mrb[29].mxu0 }
 0x38e   : > { %v1265_v51 = vpop.f32.mrb[30].mxu0 }
 0x38f   : > { %v2021_v52 = vpop.f32.mrb[31].mxu0 }
 0x390   : > { %v1308_v53 = vpop.f32.mrb[28].mxu1 }
 0x391   : > { %1685 = vst.msk [vmem:[%s2984_s25 + $0x18] sm:$0xff] %vm404_vm1, %v1308_v53  ;;  %v2026_v56 = vpop.f32.mrb[29].mxu1 }
 0x392   : > { %v1311_v57 = vpop.f32.mrb[30].mxu1 }
 0x393   : > { %v2027_v44 = vpop.f32.mrb[31].mxu1 }
 0x395   : > { %v1354_v49 = vpop.f32.mrb[32].mxu0 }
 0x396   : > { %1686 = vst.msk [vmem:[%s2984_s25 + $0x20] sm:$0xff] %vm404_vm1, %v1354_v49  ;;  %v2032_v50 = vpop.f32.mrb[33].mxu0 }
 0x397   : > { %v1357_v58 = vpop.f32.mrb[34].mxu0 }
 0x398   : > { %v2033_v59 = vpop.f32.mrb[35].mxu0  ;;  %v1400_v60 = vpop.f32.mrb[32].mxu1 }
 0x399   : > { %1687 = vst.msk [vmem:[%s2984_s25 + $0x28] sm:$0xff] %vm404_vm1, %v1400_v60  ;;  %v2038_v48 = vpop.f32.mrb[33].mxu1 }
 0x39a   : > { %v1403_v63 = vpop.f32.mrb[34].mxu1 }
 0x39b   : > { %v2039_v3 = vpop.f32.mrb[35].mxu1 }
 0x39d   : > { %v1446_v4 = vpop.f32.mrb[36].mxu0 }
 0x39e   : > { %1688 = vst.msk [vmem:[%s2984_s25 + $0x30] sm:$0xff] %vm404_vm1, %v1446_v4  ;;  %v2044_v62 = vpop.f32.mrb[37].mxu0 }
 0x39f   : > { %v1449_v61 = vpop.f32.mrb[38].mxu0 }
 0x3a0   : > { %v2045_v5 = vpop.f32.mrb[39].mxu0  ;;  %v1492_v6 = vpop.f32.mrb[36].mxu1 }
 0x3a1   : > { %1689 = vst.msk [vmem:[%s2984_s25 + $0x38] sm:$0xff] %vm404_vm1, %v1492_v6  ;;  %v2050_v7 = vpop.f32.mrb[37].mxu1 }
 0x3a2   : > { %v1495_v8 = vpop.f32.mrb[38].mxu1 }
 0x3a3   : > { %v2051_v55 = vpop.f32.mrb[39].mxu1 }
 0x3a5   : > { %v1538_v9 = vpop.f32.mrb[40].mxu0 }
 0x3a6   : > { %1690 = vst.msk [vmem:[%s2984_s25 + $0x40] sm:$0xff] %vm404_vm1, %v1538_v9  ;;  %v2056_v54 = vpop.f32.mrb[41].mxu0 }
 0x3a7   : > { %v1541_v14 = vpop.f32.mrb[42].mxu0 }
 0x3a8   : > { %v2057_v16 = vpop.f32.mrb[43].mxu0  ;;  %v1584_v17 = vpop.f32.mrb[40].mxu1 }
 0x3a9   : > { %1691 = vst.msk [vmem:[%s2984_s25 + $0x48] sm:$0xff] %vm404_vm1, %v1584_v17  ;;  %v2062_v18 = vpop.f32.mrb[41].mxu1 }
 0x3aa   : > { %v1587_v11 = vpop.f32.mrb[42].mxu1 }
 0x3ab   : > { %v2063_v20 = vpop.f32.mrb[43].mxu1 }
 0x3ad   : > { %v1630_v21 = vpop.f32.mrb[44].mxu0 }
 0x3ae   : > { %1692 = vst.msk [vmem:[%s2984_s25 + $0x50] sm:$0xff] %vm404_vm1, %v1630_v21  ;;  %v2068_v24 = vpop.f32.mrb[45].mxu0 }
 0x3af   : > { %v1633_v10 = vpop.f32.mrb[46].mxu0 }
 0x3b0   : > { %v2069_v26 = vpop.f32.mrb[47].mxu0  ;;  %v1676_v28 = vpop.f32.mrb[44].mxu1 }
 0x3b1   : > { %1693 = vst.msk [vmem:[%s2984_s25 + $0x58] sm:$0xff] %vm404_vm1, %v1676_v28  ;;  %v2074_v2 = vpop.f32.mrb[45].mxu1 }
 0x3b2   : > { %v1679_v29 = vpop.f32.mrb[46].mxu1 }
 0x3b3   : > { %2332 = shalt.err (!%p2329_p5)
}
 0x3b4   : > { %s2333_s22 = scalar_lea.hbm %s3013_s28, 1536  ;;  %s2337_s10 = scalar_lea.hbm %s3065_s4, 3072 }
 0x3b5   : > { %p2334_p1 = scmp.ne.s32.totalorder %s3013_s28, %s2333_s22  ;;  %p2338_p12 = scmp.lt.u32.totalorder %s3013_s28, %s3065_s4 }
 0x3b6   : > { %p2339_p6 = scmp.lt.u32.totalorder %s2337_s10, %s2333_s22  ;;  %p2341_p2 = scmp.lt.u32.totalorder %s2333_s22, %s3013_s28 }
 0x3b7   : > { %p2335_p7 = pnand %p2334_p1, %p3090_p0 }
 0x3b8   : > { %p2340_p13 = por %p2339_p6, %p2338_p12 }
 0x3b9   : > { %p2336_p9 = pneg %p2335_p7 }
 0x3ba   : > { %p2342_p8 = por %p2341_p2, %p2340_p13 }
 0x3bc   : > { %p2343_p10 = pnand %p2342_p8, %p2336_p9 }
 0x3be   : > { %2346 = shalt.err (!%p2343_p10)
}
 0x3bf   : > { %s2404_s24 = smov 128   ;;  %s2405_s11 = smov 8   ;;  %v2075_v1 = vpop.f32.mrb[47].mxu1 }
 0x3c0   : > { %2092 = dma.vmem_to_hbm [thread:$0]  (%p3090_p0), %s3015_s23, 1536, %s3013_s28, %s1695_s19, %s2404_s24, %s2404_s24, %s2405_s11  }
 0x3c1 PF: > { %s1723_s12 = sand.u32 1, %s2381_s15   ;;  %p3091_p11 = scmp.ne.s32.totalorder %s3078_s27, 0 }
 0x3c2   : > { %p3092_p4 = scmp.ge.s32.totalorder %s2393_s18, 2  ;;  %s1724_s25 = scalar_lea.sflag [#allocation4], %s1723_s12 }
 0x3c4   : > { %p2108_p3 = pnand %p3092_p4, %p3091_p11 }
 0x3c6   : > { %2376 = dma.done.wait (!%p2108_p3), %s1724_s25, 1536  }
 0x3c7   : > { %2378 = vsyncadd (!%p2108_p3), %s1724_s25, 4294965760  ;;  %s3093_s13 = sld [smem:[#allocation15_spill]]  ;;  %p23_p5 = scmp.ge.s32.totalorder %s2456_s21, 4  }
 0x3c8   : > { %s3094_s15 = smov %s2385_s16  ;;  %s3095_s16 = smov %s2389_s17 }
 0x3c9   : > { %s3097_s18 = smov %s2456_s21  ;;  %25 = sbr.rel (!%p23_p5) target bundleno = 12 (0xc), region = 118 }
 0x3cd   : > { %s3096_s17 = smov %s3093_s13 }
 0x3d0   :  { %1729 = vsyncpa [#allocation3], 1 }
 0x3d1   :  { %1731 = vsyncpa [#allocation3 + $0x1], 1 }
 0x3d2   :  { %1732 = vsyncpa [#allocation6], 1 }
 0x3d3   :  { %1734 = vsyncpa [#allocation6 + $0x1], 1 }
 0x3d4   :  { %1735 = vsyncpa [#allocation9], 1 }
 0x3d5   :  { %1737 = vsyncpa [#allocation9 + $0x1], 1 }
 0x3d6   :  { %1738 = vsyncpa [#allocation4], 1 }
 0x3d7   :  { %1740 = vsyncpa [#allocation4 + $0x1], 1 }

</bundles_post_ra>
